<compile_context>
chip_gen: v5e
topology: v5e:2x2
jax: 0.10.0
libtpu: 0.0.40
codegen_flags: <defaults>
</compile_context>

<pallas_src>
import numpy as np
import jax
import jax.numpy as jnp
from jax import lax
from jax.experimental import pallas as pl
from jax.experimental.pallas import tpu as pltpu


# ------------------------------ forward (Pallas) ------------------------------
def decoder_block_forward(x_nchw, kparams):
    """x_nchw: (N, Cin, H, W) float32. Returns (N, n_filters, 2H, 2W) float32."""
    w1, b1, wd, b2, w3bd, b3 = kparams
    N, Cin, H, W = x_nchw.shape
    HW = H * W
    Cmid = w1.shape[1]
    nf4 = w3bd.shape[1]
    nf = nf4 // 4

    # NCHW -> flattened NHWC (N, H*W, Cin); bf16 halves input HBM traffic.
    x = jnp.transpose(x_nchw, (0, 2, 3, 1)).reshape(N, HW, Cin).astype(jnp.bfloat16)

    def kernel(x_ref, w1_ref, b1_ref, wd_ref, b2_ref, w3_ref, b3_ref, o_ref):
        xx = x_ref[0]                                               # (HW, Cin) bf16

        # conv1 (1x1, BN1 scale pre-folded into w1) + bias + ReLU (f32 accumulation).
        t = jnp.dot(xx, w1_ref[...], preferred_element_type=jnp.float32)
        t = jnp.maximum(t + b1_ref[...], 0.0)                       # (HW, Cmid) f32

        # Shifted copies of t via XLU sublane rolls + boundary masks.
        # Flattened spatial index i = m*W + n; roll by (HW-k) == roll by -k.
        idx = lax.broadcasted_iota(jnp.int32, (HW, Cmid), 0)
        col_ok = (idx % W) != (W - 1)                               # n < W-1
        row_ok = idx < (HW - W)                                     # m < H-1
        zero = jnp.zeros_like(t)
        t_c = jnp.where(col_ok, pltpu.roll(t, HW - 1, axis=0), zero)               # t[m, n+1]
        t_r = jnp.where(row_ok, pltpu.roll(t, HW - W, axis=0), zero)               # t[m+1, n]
        t_rc = jnp.where(col_ok & row_ok, pltpu.roll(t, HW - W - 1, axis=0), zero)  # t[m+1, n+1]

        # Deconv: all 9 taps x 4 phases as ONE matmul.
        # Row blocks of wd: [t, t_r, t_c, t_rc]; column blocks: phases [p00|p01|p10|p11].
        x4 = jnp.concatenate([t, t_r, t_c, t_rc], axis=-1).astype(jnp.bfloat16)
        p = jnp.dot(x4, wd_ref[...], preferred_element_type=jnp.float32)
        p = jnp.maximum(p + b2_ref[...], 0.0)                       # BN2 bias + ReLU, all phases

        # conv3 (1x1) for all 4 phases via block-diagonal weight -> one matmul, one store.
        q = jnp.dot(p.astype(jnp.bfloat16), w3_ref[...], preferred_element_type=jnp.float32)
        q = jnp.maximum(q + b3_ref[...], 0.0)                       # (HW, 4*nf) f32

        o_ref[0] = q                                                # single lane-dense slab

    def full(a):
        return pl.BlockSpec(a.shape, lambda n, nd=a.ndim: (0,) * nd)

    out = pl.pallas_call(
        kernel,
        out_shape=jax.ShapeDtypeStruct((N, HW, nf4), jnp.float32),
        grid_spec=pltpu.PrefetchScalarGridSpec(
            num_scalar_prefetch=0,
            grid=(N,),
            in_specs=[pl.BlockSpec((1, HW, Cin), lambda n: (n, 0, 0)),
                      full(w1), full(b1), full(wd), full(b2), full(w3bd), full(b3)],
            out_specs=pl.BlockSpec((1, HW, nf4), lambda n: (n, 0, 0)),
        ),
        compiler_params=pltpu.CompilerParams(
            dimension_semantics=("parallel",),
            vmem_limit_bytes=32 * 1024 * 1024),
    )(x, w1, b1, wd, b2, w3bd, b3)

    # interleave phases: (N, H*W, 4*nf) -> (N, H, W, py, px, nf) -> (N, 2H, 2W, nf) -> NCHW
    o = out.reshape(N, H, W, 2, 2, nf)
    o = jnp.transpose(o, (0, 1, 3, 2, 4, 5)).reshape(N, 2 * H, 2 * W, nf)
    return jnp.transpose(o, (0, 3, 1, 2))


# ---------------------------- parameter setup ---------------------------------
def make_raw_params(key, in_channels, n_filters):
    Cmid = in_channels // 4
    ks = jax.random.split(key, 18)

    def rn(k, shape, scale=0.1):
        return scale * jax.random.normal(k, shape, dtype=jnp.float32)

    w1 = rn(ks[0], (in_channels, Cmid))            # conv1 weight as (Cin, Cmid)
    b1 = rn(ks[1], (Cmid,))
    wt_t = rn(ks[2], (Cmid, Cmid, 3, 3))           # deconv2 torch weight (Cin, Cout, kH, kW)
    bt = rn(ks[3], (Cmid,))
    w3 = rn(ks[4], (Cmid, n_filters))              # conv3 weight as (Cmid, nf)
    b3 = rn(ks[5], (n_filters,))

    def bn(kg, kb, km, kv, C):
        gamma = 1.0 + rn(kg, (C,))
        beta = rn(kb, (C,))
        mean = rn(km, (C,))
        var = jnp.abs(rn(kv, (C,))) + 0.5
        return gamma, beta, mean, var

    bn1 = bn(ks[6], ks[7], ks[8], ks[9], Cmid)
    bn2 = bn(ks[10], ks[11], ks[12], ks[13], Cmid)
    bn3 = bn(ks[14], ks[15], ks[16], ks[17], n_filters)
    return (w1, b1, wt_t, bt, w3, b3, bn1, bn2, bn3)


def fold_params(raw, eps=1e-5):
    """Fold BN scales into conv weights, build merged deconv / block-diag conv3 weights."""
    (w1, b1, wt_t, bt, w3, b3, bn1, bn2, bn3) = jax.tree_util.tree_map(np.asarray, raw)

    def fold(bn, conv_bias):
        gamma, beta, mean, var = bn
        s = (gamma / np.sqrt(var + eps)).astype(np.float32)
        b = (beta + s * (conv_bias - mean)).astype(np.float32)
        return s, b

    s1, bb1 = fold(bn1, b1)
    s2, bb2 = fold(bn2, bt)
    s3, bb3 = fold(bn3, b3)

    Cin, Cmid = w1.shape
    nf = w3.shape[1]

    w1f = w1 * s1[None, :]                                  # BN1 scale folded into conv1
    wtf = wt_t * s2[None, :, None, None]                    # BN2 scale folded into deconv Cout

    # Merged deconv weight: rows = shifted-input blocks [t, t_r, t_c, t_rc],
    # cols = output phase blocks [p00 | p01 | p10 | p11]  (oy%2, ox%2).
    Wbig = np.zeros((4 * Cmid, 4 * Cmid), np.float32)

    def put(rb, cb, ky, kx):
        Wbig[rb * Cmid:(rb + 1) * Cmid, cb * Cmid:(cb + 1) * Cmid] = wtf[:, :, ky, kx]

    put(0, 0, 1, 1); put(0, 1, 1, 2); put(0, 2, 2, 1); put(0, 3, 2, 2)   # from t
    put(1, 2, 0, 1); put(1, 3, 0, 2)                                     # from t_r
    put(2, 1, 1, 0); put(2, 3, 2, 0)                                     # from t_c
    put(3, 3, 0, 0)                                                      # from t_rc

    w3f = w3 * s3[None, :]                                  # BN3 scale folded into conv3
    W3bd = np.kron(np.eye(4, dtype=np.float32), w3f)        # block-diag (4*Cmid, 4*nf)

    bf16 = lambda a: jnp.asarray(a, dtype=jnp.bfloat16)
    f32 = lambda a: jnp.asarray(a, dtype=jnp.float32)
    return (bf16(w1f),
            f32(bb1.reshape(1, Cmid)),
            bf16(Wbig),
            f32(np.tile(bb2, 4).reshape(1, 4 * Cmid)),
            bf16(W3bd),
            f32(np.tile(bb3, 4).reshape(1, 4 * nf)))


# ---------------------------- numpy reference ---------------------------------
def ref_forward(x_nchw, raw, eps=1e-5):
    (w1, b1, wt_t, bt, w3, b3, bn1, bn2, bn3) = jax.tree_util.tree_map(np.asarray, raw)
    x = np.transpose(np.asarray(x_nchw), (0, 2, 3, 1)).astype(np.float32)

    def bn_relu(y, bn):
        gamma, beta, mean, var = bn
        y = gamma * (y - mean) / np.sqrt(var + eps) + beta
        return np.maximum(y, 0.0)

    y = x @ w1 + b1
    y = bn_relu(y, bn1)

    N, H, W, Cm = y.shape
    Ho, Wo = 2 * H, 2 * W
    out = np.zeros((N, Ho, Wo, Cm), np.float32)
    for ky in range(3):
        for kx in range(3):
            for iy in range(H):
                oy = 2 * iy - 1 + ky
                if oy < 0 or oy >= Ho:
                    continue
                for ix in range(W):
                    ox = 2 * ix - 1 + kx
                    if ox < 0 or ox >= Wo:
                        continue
                    out[:, oy, ox, :] += y[:, iy, ix, :] @ wt_t[:, :, ky, kx]
    out = out + bt
    out = bn_relu(out, bn2)

    z = out @ w3 + b3
    z = bn_relu(z, bn3)
    return np.transpose(z, (0, 3, 1, 2))


if __name__ == "__main__":
    N, in_channels, H, W = 2, 32, 8, 8
    n_filters = 16

    key = jax.random.PRNGKey(0)
    kx, kp = jax.random.split(key)
    x = jax.random.normal(kx, (N, in_channels, H, W), dtype=jnp.float32)

    raw = make_raw_params(kp, in_channels, n_filters)
    kparams = fold_params(raw)

    out = decoder_block_forward(x, kparams)
    out = jax.block_until_ready(out)

    ref = ref_forward(x, raw)
    # bf16 MXU inputs (f32 accumulation) -> looser tolerance than the pure-f32 path.
    np.testing.assert_allclose(np.asarray(out), ref, rtol=5e-2, atol=2e-2)
    assert out.shape == (N, n_filters, 2 * H, 2 * W)

    print("KERNEL_OK")
</pallas_src>

<mosaic_0001>
module attributes {stable_mosaic.version = 11 : i64} {
  func.func @kernel(%arg0: i32, %arg1: memref<1x64x32xbf16, #tpu.memory_space<vmem>>, %arg2: memref<32x8xbf16, #tpu.memory_space<vmem>>, %arg3: memref<1x8xf32, #tpu.memory_space<vmem>>, %arg4: memref<32x32xbf16, #tpu.memory_space<vmem>>, %arg5: memref<1x32xf32, #tpu.memory_space<vmem>>, %arg6: memref<32x64xbf16, #tpu.memory_space<vmem>>, %arg7: memref<1x64xf32, #tpu.memory_space<vmem>>, %arg8: memref<1x64x64xf32, #tpu.memory_space<vmem>>) attributes {dimension_semantics = [#tpu.dimension_semantics<parallel>], iteration_bounds = array<i64: 2>, scalar_prefetch = 0 : i64, scratch_operands = 0 : i64, tpu.core_type = #tpu.core_type<tc>, window_params = [{transform_indices = @transform_0, window_bounds = array<i64: 1, 64, 32>}, {pipeline_mode = #tpu.pipeline_mode<synchronous>, transform_indices = @transform_1, window_bounds = array<i64: 32, 8>}, {pipeline_mode = #tpu.pipeline_mode<synchronous>, transform_indices = @transform_2, window_bounds = array<i64: 1, 8>}, {pipeline_mode = #tpu.pipeline_mode<synchronous>, transform_indices = @transform_3, window_bounds = array<i64: 32, 32>}, {pipeline_mode = #tpu.pipeline_mode<synchronous>, transform_indices = @transform_4, window_bounds = array<i64: 1, 32>}, {pipeline_mode = #tpu.pipeline_mode<synchronous>, transform_indices = @transform_5, window_bounds = array<i64: 32, 64>}, {pipeline_mode = #tpu.pipeline_mode<synchronous>, transform_indices = @transform_6, window_bounds = array<i64: 1, 64>}, {transform_indices = @transform_7, window_bounds = array<i64: 1, 64, 64>}]} {
    %c0 = arith.constant 0 : index
    %c0_0 = arith.constant 0 : index
    %c0_1 = arith.constant 0 : index
    %0 = vector.load %arg1[%c0, %c0_0, %c0_1] : memref<1x64x32xbf16, #tpu.memory_space<vmem>>, vector<1x64x32xbf16>
    %1 = vector.shape_cast %0 : vector<1x64x32xbf16> to vector<64x32xbf16>
    %c0_2 = arith.constant 0 : index
    %c0_3 = arith.constant 0 : index
    %2 = vector.load %arg2[%c0_2, %c0_3] : memref<32x8xbf16, #tpu.memory_space<vmem>>, vector<32x8xbf16>
    %cst = arith.constant dense<0.000000e+00> : vector<64x8xf32>
    %3 = tpu.matmul %1, %2, %cst {dimension_numbers = #tpu.dot_dimension_numbers<[1], [0], [0], [1], [0, 0, 1, 1], [], []>} : vector<64x32xbf16>, vector<32x8xbf16>, vector<64x8xf32> -> vector<64x8xf32>
    %c0_4 = arith.constant 0 : index
    %c0_5 = arith.constant 0 : index
    %4 = vector.load %arg3[%c0_4, %c0_5] : memref<1x8xf32, #tpu.memory_space<vmem>>, vector<1x8xf32>
    %5 = vector.broadcast %4 : vector<1x8xf32> to vector<64x8xf32>
    %6 = arith.addf %3, %5 : vector<64x8xf32>
    %cst_6 = arith.constant 0.000000e+00 : f32
    %7 = vector.broadcast %cst_6 : f32 to vector<64x8xf32>
    %8 = arith.maximumf %6, %7 : vector<64x8xf32>
    %9 = tpu.iota {dimensions = array<i32: 0>} : vector<64x8xi32>
    %c8_i32 = arith.constant 8 : i32
    %c0_i32 = arith.constant 0 : i32
    %10 = arith.cmpi eq, %c8_i32, %c0_i32 : i32
    %c1_i32 = arith.constant 1 : i32
    %11 = arith.select %10, %c1_i32, %c8_i32 : i32
    %12 = vector.broadcast %11 : i32 to vector<64x8xi32>
    %13 = arith.remsi %9, %12 : vector<64x8xi32>
    %c0_i32_7 = arith.constant 0 : i32
    %14 = vector.broadcast %c0_i32_7 : i32 to vector<64x8xi32>
    %15 = arith.cmpi ne, %13, %14 : vector<64x8xi32>
    %c0_i32_8 = arith.constant 0 : i32
    %16 = vector.broadcast %c0_i32_8 : i32 to vector<64x8xi32>
    %17 = arith.cmpi slt, %13, %16 : vector<64x8xi32>
    %c0_i32_9 = arith.constant 0 : i32
    %18 = arith.cmpi slt, %11, %c0_i32_9 : i32
    %19 = vector.broadcast %18 : i1 to vector<64x8xi1>
    %20 = vector.broadcast %19 : vector<64x8xi1> to vector<64x8xi1>
    %21 = arith.xori %17, %20 : vector<64x8xi1>
    %22 = arith.andi %21, %15 : vector<64x8xi1>
    %23 = vector.broadcast %11 : i32 to vector<64x8xi32>
    %24 = arith.addi %13, %23 : vector<64x8xi32>
    %25 = arith.select %22, %24, %13 : vector<64x8xi1>, vector<64x8xi32>
    %c7_i32 = arith.constant 7 : i32
    %26 = vector.broadcast %c7_i32 : i32 to vector<64x8xi32>
    %27 = arith.cmpi ne, %25, %26 : vector<64x8xi32>
    %c56_i32 = arith.constant 56 : i32
    %28 = vector.broadcast %c56_i32 : i32 to vector<64x8xi32>
    %29 = arith.cmpi slt, %9, %28 : vector<64x8xi32>
    %cst_10 = arith.constant 0.000000e+00 : f32
    %30 = vector.broadcast %cst_10 : f32 to vector<64x8xf32>
    %c63_i32 = arith.constant 63 : i32
    %31 = tpu.dynamic_rotate %8 by %c63_i32 dim 0 : vector<64x8xf32>, i32 -> vector<64x8xf32>
    %32 = arith.select %27, %31, %30 : vector<64x8xi1>, vector<64x8xf32>
    %c56_i32_11 = arith.constant 56 : i32
    %33 = tpu.dynamic_rotate %8 by %c56_i32_11 dim 0 : vector<64x8xf32>, i32 -> vector<64x8xf32>
    %34 = arith.select %29, %33, %30 : vector<64x8xi1>, vector<64x8xf32>
    %35 = arith.andi %27, %29 : vector<64x8xi1>
    %c55_i32 = arith.constant 55 : i32
    %36 = tpu.dynamic_rotate %8 by %c55_i32 dim 0 : vector<64x8xf32>, i32 -> vector<64x8xf32>
    %37 = arith.select %35, %36, %30 : vector<64x8xi1>, vector<64x8xf32>
    %38 = tpu.concatenate %8, %34, %32, %37 in 1 : vector<64x8xf32>, vector<64x8xf32>, vector<64x8xf32>, vector<64x8xf32> -> vector<64x32xf32>
    %39 = arith.truncf %38 : vector<64x32xf32> to vector<64x32xbf16>
    %c0_12 = arith.constant 0 : index
    %c0_13 = arith.constant 0 : index
    %40 = vector.load %arg4[%c0_12, %c0_13] : memref<32x32xbf16, #tpu.memory_space<vmem>>, vector<32x32xbf16>
    %cst_14 = arith.constant dense<0.000000e+00> : vector<64x32xf32>
    %41 = tpu.matmul %39, %40, %cst_14 {dimension_numbers = #tpu.dot_dimension_numbers<[1], [0], [0], [1], [0, 0, 1, 1], [], []>} : vector<64x32xbf16>, vector<32x32xbf16>, vector<64x32xf32> -> vector<64x32xf32>
    %c0_15 = arith.constant 0 : index
    %c0_16 = arith.constant 0 : index
    %42 = vector.load %arg5[%c0_15, %c0_16] : memref<1x32xf32, #tpu.memory_space<vmem>>, vector<1x32xf32>
    %43 = vector.broadcast %42 : vector<1x32xf32> to vector<64x32xf32>
    %44 = arith.addf %41, %43 : vector<64x32xf32>
    %cst_17 = arith.constant 0.000000e+00 : f32
    %45 = vector.broadcast %cst_17 : f32 to vector<64x32xf32>
    %46 = arith.maximumf %44, %45 : vector<64x32xf32>
    %47 = arith.truncf %46 : vector<64x32xf32> to vector<64x32xbf16>
    %c0_18 = arith.constant 0 : index
    %c0_19 = arith.constant 0 : index
    %48 = vector.load %arg6[%c0_18, %c0_19] : memref<32x64xbf16, #tpu.memory_space<vmem>>, vector<32x64xbf16>
    %cst_20 = arith.constant dense<0.000000e+00> : vector<64x64xf32>
    %49 = tpu.matmul %47, %48, %cst_20 {dimension_numbers = #tpu.dot_dimension_numbers<[1], [0], [0], [1], [0, 0, 1, 1], [], []>} : vector<64x32xbf16>, vector<32x64xbf16>, vector<64x64xf32> -> vector<64x64xf32>
    %c0_21 = arith.constant 0 : index
    %c0_22 = arith.constant 0 : index
    %50 = vector.load %arg7[%c0_21, %c0_22] : memref<1x64xf32, #tpu.memory_space<vmem>>, vector<1x64xf32>
    %51 = vector.broadcast %50 : vector<1x64xf32> to vector<64x64xf32>
    %52 = arith.addf %49, %51 : vector<64x64xf32>
    %cst_23 = arith.constant 0.000000e+00 : f32
    %53 = vector.broadcast %cst_23 : f32 to vector<64x64xf32>
    %54 = arith.maximumf %52, %53 : vector<64x64xf32>
    %c0_24 = arith.constant 0 : index
    %c0_25 = arith.constant 0 : index
    %c0_26 = arith.constant 0 : index
    %55 = vector.load %arg8[%c0_24, %c0_25, %c0_26] : memref<1x64x64xf32, #tpu.memory_space<vmem>>, vector<1x64x64xf32>
    %56 = vector.shape_cast %55 : vector<1x64x64xf32> to vector<64x64xf32>
    %57 = vector.shape_cast %54 : vector<64x64xf32> to vector<1x64x64xf32>
    tpu.vector_store %arg8[%c0_24, %c0_25, %c0_26], %57 {strides = array<i32>} : memref<1x64x64xf32, #tpu.memory_space<vmem>>, vector<1x64x64xf32>,
    return
  }
  func.func @transform_0(%arg0: i32) -> (i32, i32, i32) {
    %c0_i32 = arith.constant 0 : i32
    %c0_i32_0 = arith.constant 0 : i32
    %c0_i32_1 = arith.constant 0 : i32
    return %arg0, %c0_i32, %c0_i32_0 : i32, i32, i32
  }
  func.func @transform_1(%arg0: i32) -> (i32, i32) {
    %c0_i32 = arith.constant 0 : i32
    %c0_i32_0 = arith.constant 0 : i32
    %c0_i32_1 = arith.constant 0 : i32
    return %c0_i32, %c0_i32_0 : i32, i32
  }
  func.func @transform_2(%arg0: i32) -> (i32, i32) {
    %c0_i32 = arith.constant 0 : i32
    %c0_i32_0 = arith.constant 0 : i32
    %c0_i32_1 = arith.constant 0 : i32
    return %c0_i32, %c0_i32_0 : i32, i32
  }
  func.func @transform_3(%arg0: i32) -> (i32, i32) {
    %c0_i32 = arith.constant 0 : i32
    %c0_i32_0 = arith.constant 0 : i32
    %c0_i32_1 = arith.constant 0 : i32
    return %c0_i32, %c0_i32_0 : i32, i32
  }
  func.func @transform_4(%arg0: i32) -> (i32, i32) {
    %c0_i32 = arith.constant 0 : i32
    %c0_i32_0 = arith.constant 0 : i32
    %c0_i32_1 = arith.constant 0 : i32
    return %c0_i32, %c0_i32_0 : i32, i32
  }
  func.func @transform_5(%arg0: i32) -> (i32, i32) {
    %c0_i32 = arith.constant 0 : i32
    %c0_i32_0 = arith.constant 0 : i32
    %c0_i32_1 = arith.constant 0 : i32
    return %c0_i32, %c0_i32_0 : i32, i32
  }
  func.func @transform_6(%arg0: i32) -> (i32, i32) {
    %c0_i32 = arith.constant 0 : i32
    %c0_i32_0 = arith.constant 0 : i32
    %c0_i32_1 = arith.constant 0 : i32
    return %c0_i32, %c0_i32_0 : i32, i32
  }
  func.func @transform_7(%arg0: i32) -> (i32, i32, i32) {
    %c0_i32 = arith.constant 0 : i32
    %c0_i32_0 = arith.constant 0 : i32
    %c0_i32_1 = arith.constant 0 : i32
    return %arg0, %c0_i32, %c0_i32_0 : i32, i32, i32
  }
}

</mosaic_0001>

<bundles_post_ra>
// kernel: tpu_custom_call.1
= control target key start
LH: loop header
LB: loop body
LE: loop exit
PB: predicated region body
PF: predicated region fallthrough
CT: control target
= control target key end

     0   :  { %12 = vsyncpa [#allocation3], 0  ;;  %s1500_s0 = inlined_call_operand.vmem [shape: bf16[2,64,32], index: 0, kind: input, shape index: {}]   ;;  %s1501_s1 = inlined_call_operand.vmem [shape: bf16[32,8], index: 1, kind: input, shape index: {}]   ;;  %s1502_s2 = inlined_call_operand.vmem [shape: f32[1,8], index: 2, kind: input, shape index: {}]   ;;  %s1503_s3 = inlined_call_operand.vmem [shape: bf16[32,32], index: 3, kind: input, shape index: {}]   ;;  %s1504_s4 = inlined_call_operand.vmem [shape: f32[1,32], index: 4, kind: input, shape index: {}]   ;;  %s1505_s5 = inlined_call_operand.vmem [shape: bf16[32,64], index: 5, kind: input, shape index: {}]   ;;  %s1506_s6 = inlined_call_operand.vmem [shape: f32[1,64], index: 6, kind: input, shape index: {}]   ;;  %s1507_s7 = inlined_call_operand.hbm [shape: f32[2,64,64], index: 7, kind: output, shape index: {}]  }
   0x1   :  { %14 = vsyncpa [#allocation3 + $0x1], 0  ;;  %s1199_s24 = smov 0   ;;  %s1201_s25 = smov 0  }
   0x2   :  { %s1203_s26 = smov 0   ;;  %s1205_s27 = smov 0  }
   0x3 LB: > { %s1220_s28 = sadd.s32 4294967295, %s1153_s27   ;;  %s902_s29 = sadd.s32 4294967294, %s1153_s27   ;;  %s1153_s27 = sphi %s1205_s27, %s1523_s27   ;;  %s1149_s26 = sphi %s1203_s26, %s1522_s26   ;;  %s1145_s25 = sphi %s1201_s25, %s1521_s25   ;;  %s1141_s24 = sphi %s1199_s24, %s1520_s24  }
   0x4   : > { %s1224_s30 = sadd.s32 1, %s1153_s27   ;;  %s179_s8 = sadd.s32 1, %s1149_s26 }
   0x5   : > { %s176_s9 = ssub.s32 %s1153_s27, %s1224_s30  ;;  %p189_p0 = scmp.ne.s32.totalorder %s1149_s26, %s1145_s25 }
   0x6   : > { %p177_p1 = scmp.eq.s32.totalorder %s176_s9, 0  ;;  %p190_p2 = scmp.eq.s32.totalorder %s1220_s28, 1 }
   0x7   : > { %p195_p3 = scmp.ne.s32.totalorder %s1145_s25, %s1141_s24  ;;  %p196_p4 = scmp.eq.s32.totalorder %s902_s29, 1 }
   0x8   : > { %s1235_s10 = scalar_select %p177_p1, %s1149_s26, %s179_s8  }
   0x9   : > { %p1237_p5 = por %p190_p2, %p189_p0  ;;  %p1241_p6 = por %p196_p4, %p195_p3 }
   0xa   : > { %p905_p7 = scmp.ge.s32.totalorder %s1153_s27, 1  ;;  %p240_p8 = scmp.lt.s32.totalorder %s1153_s27, 3 }
   0xc   : > { %p241_p9 = pnand %p905_p7, %p240_p8 }
   0xd   : > { %p272_p10 = scmp.lt.s32.totalorder (!%p241_p9), %s1220_s28, 1  ;;  %s1155_s29 = smov (!%p241_p9), 8  }
   0xe   : > { %244 = sbr.rel (%p241_p9) target bundleno = 633 (0x279), region = 48  ;;  %s1156_s8 = smov (!%p241_p9), 16  }
   0xf   : > { %s1157_s9 = smov (!%p241_p9), 24   ;;  %s269_s23 = sand.u32 (!%p241_p9), 1, %s1145_s25  }
  0x10   : > { %s906_s13 = sshll.u32 (!%p241_p9), %s269_s23, 6  ;;  %s977_s15 = sshll.u32 (!%p241_p9), %s1220_s28, 6 }
  0x11   : > { %s1447_s14 = scalar_lea.vmem (!%p241_p9), [#allocation2], %s906_s13  ;;  %s1111_s13 = scalar_lea.hbm (!%p241_p9), %s1507_s7, 128 }
  0x12   : > { %s837_s19 = sshll.u32 (!%p241_p9), %s1447_s14, 4  ;;  %s838_s19 = int_to_ptr.vmem [resolvable:$true] %s837_s19 }
  0x13   : > { %v972_v0 = vld [vmem:[%s1501_s1 + $0x8] sm:$0xff]  ;;  %v971_v1 = vld [vmem:[%s1501_s1] sm:$0xff]  ;;  %s273_s17 = scalar_select %p272_p10, %s1220_s28, 1  ;;  %vm326_vm0 = vcmask 261120   ;;  %v376_v8 = vlaneseq  ;;  %vm642_vm10 = vcmask 64512   ;;  %vm651_vm11 = vcmask 130048  }
  0x14   : > { %345 = vmatpush.bf16.msra.mxu0 %v972_v0  ;;  %978 = vmatpush.bf16.msra.mxu3 %v972_v0  ;;  %v1088_v9 = vld [vmem:[%s1502_s2] ss:$0 sm:$0xff]  ;;  %vm660_vm12 = vcmask 195584   ;;  %vm815_vm13 = vcmask 523264  }
  0x15   : > { %s966_s18 = sshll.u32 %s273_s17, 5  ;;  %v1265_v11 = vshrl.u32 %v376_v8, 7 }
  0x16   : > { %s276_s21 = scalar_lea.vmem %s1500_s0, %s966_s18  ;;  %s836_s18 = scalar_lea.hbm %s1507_s7, %s977_s15 }
  0x17   : > { %v967_v2 = vld [vmem:[%s276_s21] sm:$0xff]  ;;  %v968_v3 = vld [vmem:[%s276_s21 + $0x8] sm:$0xff]  ;;  %v969_v4 = vld [vmem:[%s276_s21 + $0x10] sm:$0xff]  ;;  %v380_v13 = vadd.s32 24, %v1265_v11  ;;  %v379_v17 = vadd.s32 16, %v1265_v11  ;;  %vm505_vm1 = vcmp.lt.s32.totalorder %v1265_v11, 7 }
  0x18   : > { %346 = vmatpush.bf16.msra.mxu0 %v971_v1  ;;  %979 = vmatpush.bf16.msra.mxu3 %v971_v1  ;;  %v970_v5 = vld [vmem:[%s276_s21 + $0x18] sm:$0xff]  ;;  %v381_v38 = vadd.s32 32, %v1265_v11  ;;  %v382_v39 = vadd.s32 40, %v1265_v11  ;;  %v383_v51 = vadd.s32 48, %v1265_v11  ;;  %v384_v55 = vadd.s32 56, %v1265_v11  ;;  %s839_s20 = sshll.u32 %s836_s18, 4  ;;  %s840_s20 = int_to_ptr.hbm [resolvable:$true] %s839_s20 }
  0x19   : > { %v410_v20 = vand.u32 7, %v380_v13  ;;  %v403_v24 = vand.u32 7, %v379_v17  ;;  %s825_s21 = scalar_lea.sflag [#allocation3], %s269_s23  ;;  %s1105_s28 = sshra.s32 %s840_s20, 4  ;;  %s1106_s28 = int_to_ptr.hbm [resolvable:$true] %s1105_s28 }
  0x1a   : > { %v417_v46 = vand.u32 7, %v381_v38  ;;  %v424_v47 = vand.u32 7, %v382_v39  ;;  %v431_v62 = vand.u32 7, %v383_v51  ;;  %v973_v38 = vld [vmem:[%s1503_s3] sm:$0xff]  ;;  %s1107_s22 = scalar_lea.hbm %s1106_s28, 64  ;;  %p1112_p0 = scmp.lt.s32.totalorder %s1106_s28, %s1507_s7 }
  0x1b   : > { %933 = vmatmul.msk.bf16.vlgmr.msra.gmra.mxu0 %vm326_vm0, %v967_v2  ;;  %934 = vmatmul.msk.bf16.vlgmr.msra.gmra.mxu3 %vm326_vm0, %v968_v3  ;;  %vm1282_vm2 = vcmp.ne.s32.totalorder %v410_v20, 7  ;;  %vm1288_vm3 = vcmp.ne.s32.totalorder %v403_v24, 7  ;;  %v438_v2 = vand.u32 7, %v384_v55  ;;  %p1108_p11 = scmp.ne.s32.totalorder %s1106_s28, %s1107_s22  ;;  %p1113_p1 = scmp.lt.s32.totalorder %s1111_s13, %s1107_s22 }
  0x1c   : > { %vm1322_vm4 = vcmp.ne.s32.totalorder %v417_v46, 7  ;;  %vm1326_vm5 = vcmp.ne.s32.totalorder %v424_v47, 7  ;;  %vm1351_vm6 = vcmp.ne.s32.totalorder %v431_v62, 7 }
  0x1d   : > { %vm488_vm7 = vcmp.ne.s32.totalorder %v438_v2, 7  ;;  %p1109_p12 = pnand %p1108_p11, %p1237_p5  ;;  %p1114_p2 = por %p1113_p1, %p1112_p0 }
  0x1f   : > { %p1110_p13 = pneg %p1109_p12 }
  0x21   : > { %p1115_p3 = pnand %p1114_p2, %p1110_p13 }
  0x2b   : > { %935 = vmatmul.msk.bf16.gmra.mxu3 %vm326_vm0, %v969_v4 }
  0x3b   : > { %936 = vmatmul.msk.bf16.gmra.mxu3 %vm326_vm0, %v970_v5  ;;  %v378_v5 = vadd.s32 8, %v1265_v11 }
  0x98   : > { %v348_v32 = vpop.f32.mrf.mxu0 }
  0x99   : > { %v1318_v49 = vadd.f32 %v1088_v9, %v348_v32 }
  0x9b   : > { %v368_v58 = vmax.f32 %v1318_v49, 0.0 }
  0x9e   : > { %v353_v6 = vpop.f32.mrf.mxu3 }
  0x9f   : > { %v354_v12 = vadd.f32 %v1088_v9, %v353_v6  ;;  %v497_v6 = vrot.slane %v368_v58, 1 }
  0xa0   : > { %v350_v50 = vpop.f32.mrf.mxu0 }
  0xa1   : > { %v1271_v18 = vmax.f32 %v354_v12, 0.0  ;;  %v351_v56 = vadd.f32 %v1088_v9, %v350_v50 }
  0xa3   : > { %v499_v25 = vrot.slane %v1271_v18, 1  ;;  %v1340_v3 = vmax.f32 %v351_v56, 0.0 }
  0xa5   : > { %v498_v12 = vrot.slane %v1340_v3, 1 }
  0xa6   : > { %v355_v7 = vpop.f32.mrf.mxu3 }
  0xa7   : > { %v356_v10 = vadd.f32 %v1088_v9, %v355_v7  ;;  %v511_v26 = vsel %vm505_vm1, %v498_v12, %v499_v25 }
  0xa9   : > { %v1268_v15 = vmax.f32 %v356_v10, 0.0  ;;  %v389_v10 = vand.u32 7, %v1265_v11 }
  0xab   : > { %v500_v21 = vrot.slane %v1268_v15, 1  ;;  %vm481_vm8 = vcmp.ne.s32.totalorder %v389_v10, 7 }
  0xac   : > { %v538_v11 = vsel %vm481_vm8, %v511_v26, 0.0 }
  0xad   : > { %v1296_v31 = vsel %vm505_vm1, %v499_v25, %v500_v21 }
  0xae   : > { %v358_v14 = vpop.f32.mrf.mxu3  ;;  %v516_v35 = vsel %vm1288_vm3, %v1296_v31, 0.0 }
  0xaf   : > { %v359_v16 = vadd.f32 %v1088_v9, %v358_v14 }
  0xb1   : > { %v1273_v19 = vmax.f32 %v359_v16, 0.0  ;;  %v396_v16 = vand.u32 7, %v378_v5 }
  0xb3   : > { %v501_v22 = vrot.slane %v1273_v19, 1  ;;  %v1028_v23 = vpack.i.bf16 %v1273_v19, %v1268_v15  ;;  %vm482_vm9 = vcmp.ne.s32.totalorder %v396_v16, 7 }
  0xb4   : > { %v515_v32 = vsel %vm482_vm9, %v511_v26, 0.0  ;;  %v539_v25 = vsel %vm482_vm9, %v1296_v31, 0.0 }
  0xb5   : > { %1029 = vrot.lane.b32.xlu0 %v1028_v23, %s1155_s29  ;;  %v509_v27 = vsel %vm505_vm1, %v500_v21, %v501_v22 }
  0xb6   : > { %v360_v28 = vpop.f32.mrf.mxu3  ;;  %v517_v33 = vsel %vm1282_vm2, %v509_v27, 0.0  ;;  %v540_v42 = vsel %vm1288_vm3, %v509_v27, 0.0  ;;  %v512_v27 = vsel %vm505_vm1, %v497_v6, %v498_v12 }
  0xb7   : > { %v361_v29 = vadd.f32 %v1088_v9, %v360_v28  ;;  %v1033_v37 = vpack.i.bf16 %v517_v33, %v516_v35  ;;  %v1073_v28 = vpack.i.bf16 %v1271_v18, %v1340_v3  ;;  %v514_v30 = vsel %vm481_vm8, %v512_v27, 0.0 }
  0xb8   : > { %v1078_v35 = vpack.i.bf16 %v515_v32, %v514_v30 }
  0xb9   : > { %v1300_v34 = vmax.f32 %v361_v29, 0.0 }
  0xbb   : > { %v502_v36 = vrot.slane %v1300_v34, 1 }
  0xbd   : > { %1034 = vrot.lane.b32.xlu0 %v1033_v37, %s1156_s8  ;;  %v508_v40 = vsel %vm505_vm1, %v501_v22, %v502_v36  ;;  %v974_v37 = vld [vmem:[%s1503_s3 + $0x8] sm:$0xff] }
  0xbe   : > { %v363_v41 = vpop.f32.mrf.mxu3  ;;  %v541_v43 = vsel %vm1282_vm2, %v508_v40, 0.0  ;;  %v518_v60 = vsel %vm1322_vm4, %v508_v40, 0.0  ;;  %980 = vmatpush.bf16.msra.mxu1 %v974_v37  ;;  %711 = vmatpush.bf16.msrb.mxu0 %v974_v37 }
  0xbf   : > { %v364_v44 = vadd.f32 %v1088_v9, %v363_v41  ;;  %v1038_v45 = vpack.i.bf16 %v541_v43, %v540_v42 }
  0xc1   : > { %v1315_v48 = vmax.f32 %v364_v44, 0.0  ;;  %1039 = vrot.lane.b32.xlu1 %v1038_v45, %s1157_s9 }
  0xc2   : > { %981 = vmatpush.bf16.msra.mxu1 %v973_v38  ;;  %712 = vmatpush.bf16.msrb.mxu0 %v973_v38 }
  0xc3   : > { %v503_v52 = vrot.slane %v1315_v48, 1  ;;  %v1043_v1 = vpack.i.bf16 %v1315_v48, %v1300_v34 }
  0xc5   : > { %v507_v57 = vsel %vm505_vm1, %v502_v36, %v503_v52  ;;  %v1083_v36 = vpack.i.bf16 %v539_v25, %v538_v11 }
  0xc6   : > { %v365_v59 = vpop.f32.mrf.mxu3  ;;  %v519_v61 = vsel %vm1326_vm5, %v507_v57, 0.0  ;;  %v542_v17 = vsel %vm1322_vm4, %v507_v57, 0.0 }
  0xc7   : > { %v366_v63 = vadd.f32 %v1088_v9, %v365_v59  ;;  %v1048_v0 = vpack.i.bf16 %v519_v61, %v518_v60 }
  0xc9   : > { %v1342_v4 = vmax.f32 %v366_v63, 0.0  ;;  %1049 = vrot.lane.b32.xlu2 %v1048_v0, %s1156_s8  ;;  %1044 = vrot.lane.b32.xlu1 %v1043_v1, %s1155_s29 }
  0xcb   : > { %v504_v7 = vrot.slane %v1342_v4, 1  ;;  %v1058_v8 = vpack.i.bf16 0.0, %v1342_v4 }
  0xcd   : > { %v506_v13 = vsel %vm505_vm1, %v503_v52, %v504_v7  ;;  %1059 = vrot.lane.b32.xlu0 %v1058_v8, %s1155_s29  ;;  %v513_v14 = vsel %vm505_vm1, %v504_v7, %v497_v6 }
  0xce   : > { %v543_v20 = vsel %vm1326_vm5, %v506_v13, 0.0  ;;  %v520_v21 = vsel %vm1351_vm6, %v506_v13, 0.0  ;;  %v521_v22 = vsel %vm488_vm7, %v513_v14, 0.0  ;;  %v544_v29 = vsel %vm1351_vm6, %v513_v14, 0.0 }
  0xcf   : > { %v1053_v23 = vpack.i.bf16 %v543_v20, %v542_v17  ;;  %v1063_v24 = vpack.i.bf16 %v521_v22, %v520_v21  ;;  %v1068_v33 = vpack.i.bf16 0.0, %v544_v29 }
  0xd1   : > { %1054 = vrot.lane.b32.xlu2 %v1053_v23, %s1157_s9  ;;  %1064 = vrot.lane.b32.xlu1 %v1063_v24, %s1156_s8 }
  0xd5   : > { %1074 = vrot.lane.b32.xlu0 %v1073_v28, %s1155_s29 }
  0xd9   : > { %1069 = vrot.lane.b32.xlu2 %v1068_v33, %s1157_s9  ;;  %1079 = vrot.lane.b32.xlu1 %v1078_v35, %s1156_s8 }
  0xe1   : > { %1084 = vrot.lane.b32.xlu2 %v1083_v36, %s1157_s9 }
 0x123   : > { %v1050_v40 = vpop.permute.xlu2 %1049 }
 0x124   : > { %v1052_v63 = vunpack.i.h.bf16 %v1050_v40  ;;  %v1051_v0 = vunpack.i.l.bf16 %v1050_v40 }
 0x127   : > { %v1030_v39 = vpop.permute.xlu0 %1029 }
 0x128   : > { %v1032_v31 = vunpack.i.h.bf16 %v1030_v39  ;;  %v1031_v42 = vunpack.i.l.bf16 %v1030_v39 }
 0x12a   : > { %v646_v46 = vsel %vm642_vm10, %v1268_v15, %v1032_v31  ;;  %v645_v47 = vsel %vm642_vm10, %v1271_v18, %v1031_v42  ;;  %v1089_v31 = vld [vmem:[%s1504_s4] ss:$0 sm:$0xff] }
 0x12b   : > { %v1055_v50 = vpop.permute.xlu2 %1054 }
 0x12c   : > { %v1057_v6 = vunpack.i.h.bf16 %v1055_v50  ;;  %v1056_v7 = vunpack.i.l.bf16 %v1055_v50 }
 0x12f   : > { %v1035_v41 = vpop.permute.xlu0 %1034 }
 0x130   : > { %v1037_v43 = vunpack.i.h.bf16 %v1035_v41  ;;  %v1036_v44 = vunpack.i.l.bf16 %v1035_v41 }
 0x132   : > { %v655_v53 = vsel %vm651_vm11, %v646_v46, %v1037_v43  ;;  %v654_v54 = vsel %vm651_vm11, %v645_v47, %v1036_v44 }
 0x133   : > { %v1040_v45 = vpop.permute.xlu1 %1039  ;;  %v1070_v61 = vpop.permute.xlu2 %1069 }
 0x134   : > { %v1042_v51 = vunpack.i.h.bf16 %v1040_v45  ;;  %v1041_v52 = vunpack.i.l.bf16 %v1040_v45  ;;  %v1071_v37 = vunpack.i.l.bf16 %v1070_v61 }
 0x136   : > { %v663_v55 = vsel %vm660_vm12, %v654_v54, %v1041_v52  ;;  %v664_v56 = vsel %vm660_vm12, %v655_v53, %v1042_v51 }
 0x137   : > { %v670_v57 = vpack.c.bf16 %v664_v56, %v663_v55 }
 0x139   : > { %946 = vmatmul.msk.bf16.vlgmr.msra.gmra.mxu1 %vm326_vm0, %v670_v57 }
 0x13b   : > { %v1045_v59 = vpop.permute.xlu1 %1044 }
 0x13c   : > { %v1047_v60 = vunpack.i.h.bf16 %v1045_v59  ;;  %v1046_v15 = vunpack.i.l.bf16 %v1045_v59 }
 0x13e   : > { %v648_v18 = vsel %vm642_vm10, %v1300_v34, %v1047_v60  ;;  %v647_v62 = vsel %vm642_vm10, %v1273_v19, %v1046_v15  ;;  %v1085_v34 = vpop.permute.xlu2 %1084 }
 0x13f   : > { %v1060_v1 = vpop.permute.xlu0 %1059  ;;  %v656_v2 = vsel %vm651_vm11, %v647_v62, %v1051_v0  ;;  %v657_v5 = vsel %vm651_vm11, %v648_v18, %v1052_v63  ;;  %v1087_v19 = vunpack.i.h.bf16 %v1085_v34  ;;  %v1086_v17 = vunpack.i.l.bf16 %v1085_v34 }
 0x140   : > { %v665_v9 = vsel %vm660_vm12, %v656_v2, %v1056_v7  ;;  %v666_v10 = vsel %vm660_vm12, %v657_v5, %v1057_v6  ;;  %v1062_v21 = vunpack.i.h.bf16 %v1060_v1  ;;  %v1061_v22 = vunpack.i.l.bf16 %v1060_v1 }
 0x141   : > { %v671_v13 = vpack.c.bf16 %v666_v10, %v665_v9 }
 0x142   : > { %v650_v25 = vsel %vm642_vm10, %v1342_v4, %v1062_v21  ;;  %v649_v11 = vsel %vm642_vm10, %v1315_v48, %v1061_v22  ;;  %v976_v48 = vld [vmem:[%s1505_s5 + $0x8] sm:$0xff]  ;;  %v975_v4 = vld [vmem:[%s1505_s5] sm:$0xff] }
 0x143   : > { %v1065_v8 = vpop.permute.xlu1 %1064  ;;  %982 = vmatpush.bf16.msra.mxu2 %v976_v48  ;;  %784 = vmatpush.bf16.msra.mxu0 %v976_v48 }
 0x144   : > { %v1067_v26 = vunpack.i.h.bf16 %v1065_v8  ;;  %v1066_v27 = vunpack.i.l.bf16 %v1065_v8  ;;  %v1090_v8 = vld [vmem:[%s1506_s6] ss:$0 sm:$0xff] }
 0x146   : > { %v658_v49 = vsel %vm651_vm11, %v649_v11, %v1066_v27 }
 0x147   : > { %v1075_v12 = vpop.permute.xlu0 %1074  ;;  %v667_v38 = vsel %vm660_vm12, %v658_v49, %v1071_v37  ;;  %983 = vmatpush.bf16.msra.mxu2 %v975_v4  ;;  %785 = vmatpush.bf16.msra.mxu0 %v975_v4 }
 0x148   : > { %v1077_v14 = vunpack.i.h.bf16 %v1075_v12  ;;  %v1076_v16 = vunpack.i.l.bf16 %v1075_v12 }
 0x149   : > { %947 = vmatmul.msk.bf16.gmra.mxu1 %vm326_vm0, %v671_v13 }
 0x14a   : > { %v644_v28 = vsel %vm642_vm10, %v1340_v3, %v1077_v14  ;;  %v643_v29 = vsel %vm642_vm10, %v368_v58, %v1076_v16  ;;  %v659_v3 = vsel %vm651_vm11, %v650_v25, %v1067_v26  ;;  %v1072_v58 = vunpack.i.h.bf16 %v1070_v61 }
 0x14b   : > { %v1080_v20 = vpop.permute.xlu1 %1079 }
 0x14c   : > { %v1082_v23 = vunpack.i.h.bf16 %v1080_v20  ;;  %v1081_v24 = vunpack.i.l.bf16 %v1080_v20  ;;  %v668_v39 = vsel %vm660_vm12, %v659_v3, %v1072_v58 }
 0x14d   : > { %v672_v40 = vpack.c.bf16 %v668_v39, %v667_v38 }
 0x14e   : > { %v653_v30 = vsel %vm651_vm11, %v644_v28, %v1082_v23  ;;  %v652_v32 = vsel %vm651_vm11, %v643_v29, %v1081_v24 }
 0x14f   : > { %v662_v33 = vsel %vm660_vm12, %v653_v30, %v1087_v19  ;;  %v661_v35 = vsel %vm660_vm12, %v652_v32, %v1086_v17 }
 0x150   : > { %v669_v36 = vpack.c.bf16 %v662_v33, %v661_v35 }
 0x152   : > { %945 = vmatmul.msk.bf16.vlgmr.msrb.gmra.mxu0 %vm326_vm0, %v669_v36 }
 0x159   : > { %948 = vmatmul.msk.bf16.gmra.mxu1 %vm326_vm0, %v672_v40 }
 0x1b6   : > { %v719_v41 = vpop.f32.mrf.mxu1 }
 0x1b7   : > { %v720_v42 = vadd.f32 %v1089_v31, %v719_v41 }
 0x1b9   : > { %v736_v45 = vmax.f32 %v720_v42, 0.0 }
 0x1be   : > { %v721_v43 = vpop.f32.mrf.mxu1 }
 0x1bf   : > { %v722_v44 = vadd.f32 %v1089_v31, %v721_v43 }
 0x1c1   : > { %v737_v46 = vmax.f32 %v722_v44, 0.0 }
 0x1c3   : > { %v743_v47 = vpack.c.bf16 %v737_v46, %v736_v45 }
 0x1c5   : > { %958 = vmatmul.msk.bf16.vlgmr.msra.gmra.mxu2 %vm326_vm0, %v743_v47 }
 0x1c6   : > { %v724_v50 = vpop.f32.mrf.mxu1 }
 0x1c7   : > { %v725_v51 = vadd.f32 %v1089_v31, %v724_v50 }
 0x1c9   : > { %v738_v55 = vmax.f32 %v725_v51, 0.0 }
 0x1ce   : > { %v726_v52 = vpop.f32.mrf.mxu1 }
 0x1cf   : > { %v727_v53 = vadd.f32 %v1089_v31, %v726_v52  ;;  %v714_v54 = vpop.f32.mrf.mxu0 }
 0x1d0   : > { %v715_v59 = vadd.f32 %v1089_v31, %v714_v54 }
 0x1d1   : > { %v739_v56 = vmax.f32 %v727_v53, 0.0 }
 0x1d2   : > { %v734_v18 = vmax.f32 %v715_v59, 0.0 }
 0x1d3   : > { %v744_v57 = vpack.c.bf16 %v739_v56, %v738_v55 }
 0x1d5   : > { %959 = vmatmul.msk.bf16.gmra.mxu2 %vm326_vm0, %v744_v57 }
 0x1d6   : > { %v729_v60 = vpop.f32.mrf.mxu1 }
 0x1d7   : > { %v716_v15 = vpop.f32.mrf.mxu0  ;;  %v730_v0 = vadd.f32 %v1089_v31, %v729_v60 }
 0x1d8   : > { %v717_v61 = vadd.f32 %v1089_v31, %v716_v15 }
 0x1d9   : > { %v740_v5 = vmax.f32 %v730_v0, 0.0 }
 0x1da   : > { %v735_v62 = vmax.f32 %v717_v61, 0.0 }
 0x1dc   : > { %v742_v63 = vpack.c.bf16 %v735_v62, %v734_v18 }
 0x1de   : > { %v731_v1 = vpop.f32.mrf.mxu1  ;;  %957 = vmatmul.msk.bf16.vlgmr.msra.gmra.mxu0 %vm326_vm0, %v742_v63 }
 0x1df   : > { %v732_v2 = vadd.f32 %v1089_v31, %v731_v1 }
 0x1e1   : > { %v741_v6 = vmax.f32 %v732_v2, 0.0 }
 0x1e3   : > { %v745_v7 = vpack.c.bf16 %v741_v6, %v740_v5 }
 0x1e5   : > { %960 = vmatmul.msk.bf16.gmra.mxu2 %vm326_vm0, %v745_v7 }
 0x248   : > { %v792_v9 = vpop.f32.mrf.mxu2 }
 0x249   : > { %v793_v10 = vadd.f32 %v1090_v8, %v792_v9 }
 0x24b   : > { %v809_v12 = vmax.f32 %v793_v10, 0.0 }
 0x24d   : > { %818 = vst.msk [vmem:[%s1447_s14 + $0x10] sm:$0xff] %vm815_vm13, %v809_v12 }
 0x250   : > { %v794_v13 = vpop.f32.mrf.mxu2 }
 0x251   : > { %v795_v34 = vadd.f32 %v1090_v8, %v794_v13 }
 0x253   : > { %v810_v14 = vmax.f32 %v795_v34, 0.0 }
 0x255   : > { %819 = vst.msk [vmem:[%s1447_s14 + $0x18] sm:$0xff] %vm815_vm13, %v810_v14 }
 0x258   : > { %v797_v16 = vpop.f32.mrf.mxu2 }
 0x259   : > { %v798_v19 = vadd.f32 %v1090_v8, %v797_v16 }
 0x25b   : > { %v811_v17 = vmax.f32 %v798_v19, 0.0  ;;  %v787_v20 = vpop.f32.mrf.mxu0 }
 0x25c   : > { %v788_v21 = vadd.f32 %v1090_v8, %v787_v20 }
 0x25d   : > { %820 = vst.msk [vmem:[%s1447_s14 + $0x20] sm:$0xff] %vm815_vm13, %v811_v17 }
 0x25e   : > { %v807_v22 = vmax.f32 %v788_v21, 0.0 }
 0x260   : > { %816 = vst.msk [vmem:[%s1447_s14] sm:$0xff] %vm815_vm13, %v807_v22  ;;  %v799_v23 = vpop.f32.mrf.mxu2 }
 0x261   : > { %v800_v24 = vadd.f32 %v1090_v8, %v799_v23 }
 0x263   : > { %v812_v26 = vmax.f32 %v800_v24, 0.0  ;;  %v789_v27 = vpop.f32.mrf.mxu0 }
 0x264   : > { %v790_v28 = vadd.f32 %v1090_v8, %v789_v27 }
 0x265   : > { %821 = vst.msk [vmem:[%s1447_s14 + $0x28] sm:$0xff] %vm815_vm13, %v812_v26 }
 0x266   : > { %v808_v29 = vmax.f32 %v790_v28, 0.0 }
 0x268   : > { %817 = vst.msk [vmem:[%s1447_s14 + $0x8] sm:$0xff] %vm815_vm13, %v808_v29  ;;  %v802_v30 = vpop.f32.mrf.mxu2 }
 0x269   : > { %v803_v32 = vadd.f32 %v1090_v8, %v802_v30 }
 0x26b   : > { %v813_v33 = vmax.f32 %v803_v32, 0.0 }
 0x26d   : > { %822 = vst.msk [vmem:[%s1447_s14 + $0x30] sm:$0xff] %vm815_vm13, %v813_v33 }
 0x270   : > { %v804_v35 = vpop.f32.mrf.mxu2 }
 0x271   : > { %v805_v25 = vadd.f32 %v1090_v8, %v804_v35 }
 0x273   : > { %v814_v11 = vmax.f32 %v805_v25, 0.0 }
 0x275   : > { %823 = vst.msk [vmem:[%s1447_s14 + $0x38] sm:$0xff] %vm815_vm13, %v814_v11 }
 0x276   : > { %1118 = shalt.err (!%p1115_p3)
}
 0x277   : > { %s1158_s23 = smov 128  }
 0x278   : > { %984 = dma.vmem_to_hbm [thread:$0]  (%p1237_p5), %s838_s19, 1024, %s840_s20, %s825_s21, %s1158_s23, %s1158_s23, %s1155_s29  }
 0x279 PF: > { %p990_p4 = scmp.ge.s32.totalorder %s1153_s27, 2  ;;  %s854_s14 = sand.u32 1, %s1141_s24  }
 0x27a   : > { %s855_s17 = scalar_lea.sflag [#allocation3], %s854_s14 }
 0x27b   : > { %p987_p7 = pnand %p990_p4, %p1241_p6 }
 0x27d   : > { %p988_p8 = pneg %p987_p7 }
 0x27f   : > { %1136 = dma.done.wait (%p988_p8), %s855_s17, 1024  }
 0x280   : > { %1138 = vsyncadd (%p988_p8), %s855_s17, 4294966272  ;;  %p17_p9 = scmp.ge.s32.totalorder %s1224_s30, 4   ;;  %s1520_s24 = smov %s1145_s25 }
 0x281   : > { %s1521_s25 = smov %s1149_s26  ;;  %s1522_s26 = smov %s1235_s10 }
 0x282   : > { %s1523_s27 = smov %s1224_s30  ;;  %19 = sbr.rel (!%p17_p9) target bundleno = 3 (0x3), region = 83 }
 0x287   :  { %861 = vsyncpa [#allocation3], 1 }
 0x288   :  { %863 = vsyncpa [#allocation3 + $0x1], 1 }

</bundles_post_ra>
